<compile_context>
chip_gen: v7x
topology: tpu7x:2x2x1
jax: 0.10.0
libtpu: 0.0.40
codegen_flags: <defaults>
</compile_context>

<pallas_src>
import functools

import jax
import jax.numpy as jnp
from jax.experimental import pallas as pl
from jax.experimental.pallas import tpu as pltpu


def _round_up(x, m):
    return (x + m - 1) // m * m


def _mlp_kernel(x_ref, w1_ref, b1_ref, w2_ref, b2_ref, o_ref):
    # x:  (TB, D_in)          w1: (D_in, H_pad)     b1: (1, H_pad)  [f32]
    # w2: (H_pad, D_out)      b2: (1, D_out)        o:  (TB, D_out)
    x = x_ref[...].astype(w1_ref.dtype)          # no-op when dtypes match

    # fc1: x @ W1 (MXU, f32 accumulate) + bias, tanh in f32 (EUP).
    h = jnp.dot(x, w1_ref[...], preferred_element_type=jnp.float32)
    h = jnp.tanh(h + b1_ref[...].astype(jnp.float32))

    # fc2: h @ W2 (MXU, f32 accumulate) + bias.
    y = jnp.dot(h.astype(w2_ref.dtype), w2_ref[...],
                preferred_element_type=jnp.float32)
    y = y + b2_ref[...].astype(jnp.float32)

    o_ref[...] = y.astype(o_ref.dtype)


def prepare_params(w1, b1, w2, b2, *, matmul_dtype=jnp.float32):
    """One-time parameter prep (do NOT call per forward):
    - transpose PyTorch (out, in) weights to (in, out),
    - zero-pad the hidden dim to a multiple of 128 (lane-dense intermediate;
      exact because tanh(0)=0 and the padded w2 rows are zero),
    - output dim stays UNPADDED (output block uses the full last dim),
    - optionally cast matmul operands to bf16 (accumulation stays f32).
    Biases stay f32 (elementwise path)."""
    H, D_in = w1.shape
    D_out = w2.shape[0]
    H_pad = _round_up(H, 128)

    w1_t = jnp.transpose(w1)                        # (D_in, H)
    w2_t = jnp.transpose(w2)                        # (H, D_out)
    w1_t = jnp.pad(w1_t, ((0, 0), (0, H_pad - H))).astype(matmul_dtype)
    w2_t = jnp.pad(w2_t, ((0, H_pad - H), (0, 0))).astype(matmul_dtype)
    b1_r = jnp.pad(b1.astype(jnp.float32), (0, H_pad - H)).reshape(1, H_pad)
    b2_r = b2.astype(jnp.float32).reshape(1, D_out)
    return {"w1": w1_t, "b1": b1_r, "w2": w2_t, "b2": b2_r}


@functools.partial(jax.jit, static_argnames=("block_b", "out_dtype"))
def _net_forward_impl(x, w1, b1, w2, b2, *, block_b, out_dtype):
    B, D_in = x.shape
    H_pad = w1.shape[1]
    D_out = w2.shape[1]

    # Balanced batch tiling: big tiles to amortize the ~0.35 us per-step
    # pipeline overhead, but never overshoot B by more than one sublane group,
    # and force >=2 tiles for large B so megacore (v7x) actually splits work.
    block_b = _round_up(max(int(block_b), 8), 8)
    num_tiles = pl.cdiv(B, block_b)
    if B >= 1024:
        num_tiles = max(num_tiles, 2)
    TB = min(_round_up(pl.cdiv(B, num_tiles), 8), block_b)
    B_pad = _round_up(B, TB)
    if B_pad != B:
        x = jnp.pad(x, ((0, B_pad - B), (0, 0)))
    grid = (B_pad // TB,)

    # VMEM budget: double-buffered x/out tiles + (double-buffered) resident
    # params + f32 intermediates, plus headroom.  Stays well inside v7x's
    # 64 MiB VMEM even at TB=8192.
    itemsize = 4
    vmem_bytes = int(
        2 * (TB * D_in + TB * D_out) * itemsize         # pipelined I/O tiles
        + 2 * (D_in * H_pad + H_pad * D_out) * itemsize  # resident weights
        + 2 * (H_pad + D_out) * itemsize                 # resident biases
        + 2 * TB * H_pad * itemsize                      # f32 intermediates
    ) + (8 << 20)                                        # headroom
    vmem_bytes = min(max(vmem_bytes, 16 << 20), 48 << 20)

    out = pl.pallas_call(
        _mlp_kernel,
        out_shape=jax.ShapeDtypeStruct((B_pad, D_out), out_dtype),
        grid=grid,
        in_specs=[
            pl.BlockSpec((TB, D_in), lambda i: (i, 0)),      # streamed per tile
            pl.BlockSpec((D_in, H_pad), lambda i: (0, 0)),   # VMEM-resident
            pl.BlockSpec((1, H_pad), lambda i: (0, 0)),      # VMEM-resident
            pl.BlockSpec((H_pad, D_out), lambda i: (0, 0)),  # VMEM-resident
            pl.BlockSpec((1, D_out), lambda i: (0, 0)),      # VMEM-resident
        ],
        out_specs=pl.BlockSpec((TB, D_out), lambda i: (i, 0)),  # unpadded lanes
        compiler_params=pltpu.CompilerParams(
            dimension_semantics=("parallel",),   # megacore split on v7x
            vmem_limit_bytes=vmem_bytes,
        ),
    )(x, w1, b1, w2, b2)

    if B_pad != B:                      # static Python ints -> cheap row slice
        out = out[:B]
    return out


def net_forward(x, params, *, block_b=4096, out_dtype=jnp.float32):
    """Fused fc1 -> tanh -> fc2 forward.  `params` from `prepare_params`."""
    x = x.astype(params["w1"].dtype)    # cast once in the wrapper (no-op if f32)
    return _net_forward_impl(x, params["w1"], params["b1"],
                             params["w2"], params["b2"],
                             block_b=block_b, out_dtype=out_dtype)


def init_params(key, input_size, hidden_size, num_distros):
    """Deterministic PyTorch-style Linear init: U(-1/sqrt(fan_in), 1/sqrt(fan_in))."""
    k1, k2, k3, k4 = jax.random.split(key, 4)
    lim1 = 1.0 / jnp.sqrt(jnp.float32(input_size))
    lim2 = 1.0 / jnp.sqrt(jnp.float32(hidden_size))
    w1 = jax.random.uniform(k1, (hidden_size, input_size), jnp.float32, -lim1, lim1)
    b1 = jax.random.uniform(k2, (hidden_size,), jnp.float32, -lim1, lim1)
    w2 = jax.random.uniform(k3, (num_distros, hidden_size), jnp.float32, -lim2, lim2)
    b2 = jax.random.uniform(k4, (num_distros,), jnp.float32, -lim2, lim2)
    return w1, b1, w2, b2


if __name__ == "__main__":
    # Small shapes consistent with Net(input_size, hidden_size, num_distros).
    B, input_size, hidden_size, num_distros = 8, 16, 32, 24

    key = jax.random.PRNGKey(0)
    kx, kp = jax.random.split(key)
    x = jax.random.normal(kx, (B, input_size), jnp.float32)
    w1, b1, w2, b2 = init_params(kp, input_size, hidden_size, num_distros)

    # One-time parameter prep (transpose + pad), then the fused forward.
    # (Use matmul_dtype=jnp.bfloat16 on v6e/v7x for large H/D_in; kept f32 here
    #  so the 1e-5 reference check below holds.)
    params = prepare_params(w1, b1, w2, b2, matmul_dtype=jnp.float32)

    out = net_forward(x, params)
    out = jax.block_until_ready(out)

    # Reference check against plain JAX.
    ref = jnp.tanh(x @ w1.T + b1) @ w2.T + b2
    assert out.shape == (B, num_distros)
    assert jnp.allclose(out, ref, atol=1e-5, rtol=1e-5), "mismatch vs reference"

    # TODO(synk): get_mixture_coef's NumPy softmax/exp post-processing is host-side
    # code in the original module and is not part of forward(); not ported here.

    print("KERNEL_OK")
</pallas_src>

<mosaic_0001>
module attributes {stable_mosaic.version = 11 : i64} {
  func.func @_mlp_kernel(%arg0: i32, %arg1: memref<8x16xf32, #tpu.memory_space<vmem>>, %arg2: memref<16x128xf32, #tpu.memory_space<vmem>>, %arg3: memref<1x128xf32, #tpu.memory_space<vmem>>, %arg4: memref<128x24xf32, #tpu.memory_space<vmem>>, %arg5: memref<1x24xf32, #tpu.memory_space<vmem>>, %arg6: memref<8x24xf32, #tpu.memory_space<vmem>>) attributes {dimension_semantics = [#tpu.dimension_semantics<parallel>], iteration_bounds = array<i64: 1>, scalar_prefetch = 0 : i64, scratch_operands = 0 : i64, tpu.core_type = #tpu.core_type<tc>, window_params = [{transform_indices = @transform_0, window_bounds = array<i64: 8, 16>}, {pipeline_mode = #tpu.pipeline_mode<synchronous>, transform_indices = @transform_1, window_bounds = array<i64: 16, 128>}, {pipeline_mode = #tpu.pipeline_mode<synchronous>, transform_indices = @transform_2, window_bounds = array<i64: 1, 128>}, {pipeline_mode = #tpu.pipeline_mode<synchronous>, transform_indices = @transform_3, window_bounds = array<i64: 128, 24>}, {pipeline_mode = #tpu.pipeline_mode<synchronous>, transform_indices = @transform_4, window_bounds = array<i64: 1, 24>}, {transform_indices = @transform_5, window_bounds = array<i64: 8, 24>}]} {
    %c0 = arith.constant 0 : index
    %c0_0 = arith.constant 0 : index
    %0 = vector.load %arg1[%c0, %c0_0] : memref<8x16xf32, #tpu.memory_space<vmem>>, vector<8x16xf32>
    %c0_1 = arith.constant 0 : index
    %c0_2 = arith.constant 0 : index
    %1 = vector.load %arg2[%c0_1, %c0_2] : memref<16x128xf32, #tpu.memory_space<vmem>>, vector<16x128xf32>
    %cst = arith.constant dense<0.000000e+00> : vector<8x128xf32>
    %2 = tpu.matmul %0, %1, %cst {dimension_numbers = #tpu.dot_dimension_numbers<[1], [0], [0], [1], [0, 0, 1, 1], [], []>} : vector<8x16xf32>, vector<16x128xf32>, vector<8x128xf32> -> vector<8x128xf32>
    %c0_3 = arith.constant 0 : index
    %c0_4 = arith.constant 0 : index
    %3 = vector.load %arg3[%c0_3, %c0_4] : memref<1x128xf32, #tpu.memory_space<vmem>>, vector<1x128xf32>
    %4 = vector.broadcast %3 : vector<1x128xf32> to vector<8x128xf32>
    %5 = arith.addf %2, %4 : vector<8x128xf32>
    %6 = math.tanh %5 : vector<8x128xf32>
    %c0_5 = arith.constant 0 : index
    %c0_6 = arith.constant 0 : index
    %7 = vector.load %arg4[%c0_5, %c0_6] : memref<128x24xf32, #tpu.memory_space<vmem>>, vector<128x24xf32>
    %cst_7 = arith.constant dense<0.000000e+00> : vector<8x24xf32>
    %8 = tpu.matmul %6, %7, %cst_7 {dimension_numbers = #tpu.dot_dimension_numbers<[1], [0], [0], [1], [0, 0, 1, 1], [], []>} : vector<8x128xf32>, vector<128x24xf32>, vector<8x24xf32> -> vector<8x24xf32>
    %c0_8 = arith.constant 0 : index
    %c0_9 = arith.constant 0 : index
    %9 = vector.load %arg5[%c0_8, %c0_9] : memref<1x24xf32, #tpu.memory_space<vmem>>, vector<1x24xf32>
    %10 = vector.broadcast %9 : vector<1x24xf32> to vector<8x24xf32>
    %11 = arith.addf %8, %10 : vector<8x24xf32>
    %c0_10 = arith.constant 0 : index
    %c0_11 = arith.constant 0 : index
    %12 = vector.load %arg6[%c0_10, %c0_11] : memref<8x24xf32, #tpu.memory_space<vmem>>, vector<8x24xf32>
    tpu.vector_store %arg6[%c0_10, %c0_11], %11 {strides = array<i32>} : memref<8x24xf32, #tpu.memory_space<vmem>>, vector<8x24xf32>,
    return
  }
  func.func @transform_0(%arg0: i32) -> (i32, i32) {
    %c0_i32 = arith.constant 0 : i32
    %c0_i32_0 = arith.constant 0 : i32
    return %arg0, %c0_i32 : i32, i32
  }
  func.func @transform_1(%arg0: i32) -> (i32, i32) {
    %c0_i32 = arith.constant 0 : i32
    %c0_i32_0 = arith.constant 0 : i32
    %c0_i32_1 = arith.constant 0 : i32
    return %c0_i32, %c0_i32_0 : i32, i32
  }
  func.func @transform_2(%arg0: i32) -> (i32, i32) {
    %c0_i32 = arith.constant 0 : i32
    %c0_i32_0 = arith.constant 0 : i32
    %c0_i32_1 = arith.constant 0 : i32
    return %c0_i32, %c0_i32_0 : i32, i32
  }
  func.func @transform_3(%arg0: i32) -> (i32, i32) {
    %c0_i32 = arith.constant 0 : i32
    %c0_i32_0 = arith.constant 0 : i32
    %c0_i32_1 = arith.constant 0 : i32
    return %c0_i32, %c0_i32_0 : i32, i32
  }
  func.func @transform_4(%arg0: i32) -> (i32, i32) {
    %c0_i32 = arith.constant 0 : i32
    %c0_i32_0 = arith.constant 0 : i32
    %c0_i32_1 = arith.constant 0 : i32
    return %c0_i32, %c0_i32_0 : i32, i32
  }
  func.func @transform_5(%arg0: i32) -> (i32, i32) {
    %c0_i32 = arith.constant 0 : i32
    %c0_i32_0 = arith.constant 0 : i32
    return %arg0, %c0_i32 : i32, i32
  }
}

</mosaic_0001>

<bundles_post_ra>
// kernel: _net_forward_impl.1
= control target key start
LH: loop header
LB: loop body
LE: loop exit
PB: predicated region body
PF: predicated region fallthrough
CT: control target
= control target key end

     0   :  { %v337_v2 = vmov 0.0|0.0   ;;  %vm338_vm0 = vmmov 0   ;;  %v339_v4 = vmov 0.0   ;;  %vm31_vm1 = vcmask 130048   ;;  %s446_s0 = inlined_call_operand.vmem [shape: f32[8,16], index: 0, kind: input, shape index: {}]   ;;  %s447_s1 = inlined_call_operand.vmem [shape: f32[16,128], index: 1, kind: input, shape index: {}]   ;;  %s448_s2 = inlined_call_operand.vmem [shape: f32[1,128], index: 2, kind: input, shape index: {}]   ;;  %s449_s3 = inlined_call_operand.vmem [shape: f32[128,24], index: 3, kind: input, shape index: {}]   ;;  %s450_s4 = inlined_call_operand.vmem [shape: f32[1,24], index: 4, kind: input, shape index: {}]   ;;  %s451_s5 = inlined_call_operand.hbm [shape: f32[8,24], index: 5, kind: output, shape index: {}]  }
   0x1   :  { %v22_v0 = vld [vmem:[%s447_s1] sm:$0xff]  ;;  %v23_v1 = vld [vmem:[%s447_s1 + $0x8] sm:$0xff]  ;;  %280 = vmatprep.subr.bf16.mxu0 %v337_v2  ;;  %242 = vmatprep.mubr.msk.f32.mxu0 %vm338_vm0, %v339_v4  ;;  %v108_v7 = vld [vmem:[%s449_s3 + $0x10] sm:$0xff] }
   0x2   :  { %v281_v3 = vpack.c.bf16 %v23_v1, %v22_v0  ;;  %v106_v5 = vld [vmem:[%s449_s3] sm:$0xff]  ;;  %v107_v6 = vld [vmem:[%s449_s3 + $0x8] sm:$0xff]  ;;  %283 = vmatprep.subr.bf16.mxu1 %v337_v2  ;;  %v109_v9 = vld [vmem:[%s449_s3 + $0x18] sm:$0xff]  ;;  %277 = vmatprep.mubr.msk.f32.mxu1 %vm338_vm0, %v339_v4 }
   0x3   :  { %v284_v8 = vpack.c.bf16 %v107_v6, %v106_v5  ;;  %v21_v10 = vld [vmem:[%s446_s0] sm:$0xff]  ;;  %v287_v11 = vpack.c.bf16 %v109_v9, %v108_v7 }
   0x4   :  { %282 = vmatpush3.bf16.msra.mxu0 %v281_v3 }
   0x5   :  { %285 = vmatpush3.bf16.msra.mxu1 %v284_v8 }
   0x6   :  { %10 = vsyncpa [#allocation3], 0  ;;  %286 = vmatprep.subr.bf16.mxu1 %v337_v2  ;;  %v110_v12 = vld [vmem:[%s449_s3 + $0x20] sm:$0xff]  ;;  %v111_v13 = vld [vmem:[%s449_s3 + $0x28] sm:$0xff]  ;;  %s340_s7 = smov [#allocation2]   ;;  %vm199_vm2 = vcmask 195584  }
   0x7   :  { %243 = vmatmul.mubr.msk.f32.vlgmr.msra.gmra.mrb[0].mxu0 %vm31_vm1, %v21_v10  ;;  %v290_v14 = vpack.c.bf16 %v111_v13, %v110_v12  ;;  %v112_v15 = vld [vmem:[%s449_s3 + $0x30] sm:$0xff]  ;;  %v113_v16 = vld [vmem:[%s449_s3 + $0x38] sm:$0xff]  ;;  %v114_v18 = vld [vmem:[%s449_s3 + $0x40] sm:$0xff] }
   0x8   :  { %v293_v17 = vpack.c.bf16 %v113_v16, %v112_v15  ;;  %v115_v19 = vld [vmem:[%s449_s3 + $0x48] sm:$0xff]  ;;  %v116_v21 = vld [vmem:[%s449_s3 + $0x50] sm:$0xff]  ;;  %v117_v22 = vld [vmem:[%s449_s3 + $0x58] sm:$0xff] }
   0x9   :  { %288 = vmatpush3.bf16.msra.mxu1 %v287_v11  ;;  %v296_v20 = vpack.c.bf16 %v115_v19, %v114_v18  ;;  %v299_v23 = vpack.c.bf16 %v117_v22, %v116_v21  ;;  %v118_v24 = vld [vmem:[%s449_s3 + $0x60] sm:$0xff]  ;;  %v119_v25 = vld [vmem:[%s449_s3 + $0x68] sm:$0xff]  ;;  %v120_v27 = vld [vmem:[%s449_s3 + $0x70] sm:$0xff] }
   0xa   :  { %289 = vmatprep.subr.bf16.mxu1 %v337_v2  ;;  %v302_v26 = vpack.c.bf16 %v119_v25, %v118_v24  ;;  %v121_v28 = vld [vmem:[%s449_s3 + $0x78] sm:$0xff]  ;;  %v215_v30 = vld [vmem:[%s448_s2] ss:$0 sm:$0xff]  ;;  %s207_s3 = sshll.u32 %s340_s7, 4  ;;  %s208_s3 = int_to_ptr.vmem [resolvable:$true] %s207_s3 }
   0xb   :  { %v305_v29 = vpack.c.bf16 %v121_v28, %v120_v27  ;;  %v217_v35 = vld [vmem:[%s450_s4] ss:$0 sm:$0xff]  ;;  %s313_s8 = scalar_lea.vmem %s208_s3, 128  ;;  %p318_p1 = scmp.lt.s32.totalorder %s208_s3, %s208_s3 }
   0xc   :  { %p314_p0 = scmp.ne.s32.totalorder %s208_s3, %s313_s8  ;;  %p319_p2 = scmp.lt.s32.totalorder %s313_s8, %s313_s8 }
   0xd   :  { %291 = vmatpush3.bf16.msra.mxu1 %v290_v14 }
   0xe   :  { %292 = vmatprep.subr.bf16.mxu1 %v337_v2  ;;  %p320_p3 = por %p319_p2, %p318_p1 }
  0x10   :  { %p321_p4 = pnand %p320_p3, %p314_p0 }
  0x11   :  { %294 = vmatpush3.bf16.msra.mxu1 %v293_v17 }
  0x12   :  { %295 = vmatprep.subr.bf16.mxu1 %v337_v2 }
  0x15   :  { %297 = vmatpush3.bf16.msra.mxu1 %v296_v20 }
  0x16   :  { %298 = vmatprep.subr.bf16.mxu1 %v337_v2 }
  0x19   :  { %300 = vmatpush3.bf16.msra.mxu1 %v299_v23 }
  0x1a   :  { %301 = vmatprep.subr.bf16.mxu1 %v337_v2 }
  0x1d   :  { %303 = vmatpush3.bf16.msra.mxu1 %v302_v26 }
  0x1e   :  { %304 = vmatprep.subr.bf16.mxu1 %v337_v2 }
  0x21   :  { %306 = vmatpush3.bf16.msra.mxu1 %v305_v29 }
  0xda   :  { %v101_v31 = vpop.f32.mrb[0].mxu0 }
  0xdb   :  { %v102_v32 = vadd.f32 %v215_v30, %v101_v31  ;;  %v244_v33 = vpop.f32.mrb[1].mxu0 }
  0xdd   :  { %311 = vtanh.f32 %v102_v32 }
  0xe7   :  { %v312_v34 = vpop.eup %311 }
  0xe8   :  { %278 = vmatmul.mubr.f32.vlgmr.msra.gmra.mrb[0].mxu1 %v312_v34 }
 0x1bb   :  { %v195_v36 = vpop.f32.mrb[0].mxu1 }
 0x1bc   :  { %v196_v37 = vadd.f32 %v217_v35, %v195_v36  ;;  %v279_v38 = vpop.f32.mrb[1].mxu1 }
 0x1be   :  { %200 = vst.msk [vmem:[#allocation2] sm:$0xff] %vm199_vm2, %v196_v37 }
 0x1bf   :  { %324 = shalt.err (!%p321_p4)
}
 0x1c0   :  { %s325_s10 = scalar_lea.hbm %s451_s5, 128 }
 0x1c1   :  { %p326_p5 = scmp.ne.s32.totalorder %s451_s5, %s325_s10  ;;  %p329_p6 = scmp.lt.u32.totalorder %s325_s10, %s451_s5 }
 0x1c3   :  { %p331_p7 = pnand %p329_p6, %p326_p5 }
 0x1c5   :  { %334 = shalt.err (!%p331_p7)
}
 0x1c6   :  { %210 = dma.vmem_to_hbm [thread:$0]  %s208_s3, 128, %s451_s5, [#allocation3]  }
 0x1c7   :  { %335 = dma.done.wait [#allocation3], 128  }
 0x1c8   :  { %336 = vsyncadd [#allocation3], 4294967168 }
 0x1c9   :  { %214 = vsyncpa [#allocation3], 1 }

</bundles_post_ra>
